<compile_context>
chip_gen: v6e
topology: v6e:2x2x1
jax: 0.10.0
libtpu: 0.0.40
codegen_flags: <defaults>
</compile_context>

<pallas_src>
import functools

import jax
import jax.numpy as jnp
from jax.experimental import pallas as pl
from jax.experimental.pallas import tpu as pltpu


# ----------------------------- helpers -----------------------------
def _row_tile(n):
    """Largest convenient row tile (multiple of 8 sublanes) dividing n, capped at 512."""
    for t in (512, 256, 128, 64, 32, 16, 8):
        if n % t == 0:
            return t
    return n  # tiny / odd n: full extent (block dim == array dim is always legal)


# ----------------------------- kernel 1: fused QKV projection -----------------------------
def _qkv_kernel(x_ref, w_ref, b_ref, q_ref, k_ref, v_ref):
    D = q_ref.shape[-1]
    # one weight-stationary MXU pass over the x tile: (TM, D) @ (D, 3D) -> f32 acc
    acc = jnp.dot(x_ref[...], w_ref[...], preferred_element_type=jnp.float32)
    acc = acc + b_ref[...]
    q_ref[...] = acc[:, :D].astype(q_ref.dtype)
    k_ref[...] = acc[:, D:2 * D].astype(k_ref.dtype)
    v_ref[...] = acc[:, 2 * D:].astype(v_ref.dtype)


def qkv_projection(x2d_bf16, wqkv_t, bqkv):
    N, D = x2d_bf16.shape
    tm = _row_tile(N)
    row_spec = pl.BlockSpec((tm, D), lambda i: (i, 0))
    out_sd = jax.ShapeDtypeStruct((N, D), jnp.bfloat16)
    return pl.pallas_call(
        _qkv_kernel,
        grid=(pl.cdiv(N, tm),),
        in_specs=[
            row_spec,                                    # x tile (pipelined)
            pl.BlockSpec((D, 3 * D), lambda i: (0, 0)),  # packed weight, grid-invariant
            pl.BlockSpec((1, 3 * D), lambda i: (0, 0)),  # packed bias, grid-invariant
        ],
        out_specs=(row_spec, row_spec, row_spec),
        out_shape=(out_sd, out_sd, out_sd),
        compiler_params=pltpu.CompilerParams(dimension_semantics=("parallel",)),
    )(x2d_bf16, wqkv_t, bqkv)


# ----------------------------- kernel 2: scaled dot-product attention -----------------------------
def _make_attn_kernel(scale):
    def _attn_kernel(q_ref, k_ref, v_ref, o_ref):
        # scale folded into Q (L*Dh mults instead of L*L); stays bf16 for the MXU
        q = (q_ref[...] * scale).astype(q_ref.dtype)
        k = k_ref[...]
        v = v_ref[...]
        # batched QK^T on the MXU, contracting the last dims — no explicit K transpose
        s = jnp.einsum("gqd,gkd->gqk", q, k, preferred_element_type=jnp.float32)
        m = jnp.max(s, axis=-1, keepdims=True)
        p = jnp.exp(s - m)
        denom = jnp.sum(p, axis=-1, keepdims=True)
        inv = pl.reciprocal(denom, approx=True)          # EUP slot, off the VALU path
        ctx = jnp.einsum("gqk,gkd->gqd", p.astype(v.dtype), v,
                         preferred_element_type=jnp.float32)
        o_ref[...] = (ctx * inv).astype(o_ref.dtype)     # normalize output rows
    return _attn_kernel


def scaled_dot_product_attention(q, k, v, scale):
    BH, L, Dh = q.shape
    # G heads per grid step so the MXU sees >=128 of work per pass and the
    # ~0.35us per-step overhead is amortized.
    G = max(1, min(BH, 128 // max(Dh, 1)))
    while BH % G:
        G -= 1
    spec = pl.BlockSpec((G, L, Dh), lambda i: (i, 0, 0))
    return pl.pallas_call(
        _make_attn_kernel(scale),
        grid=(BH // G,),
        in_specs=[spec, spec, spec],
        out_specs=spec,
        out_shape=jax.ShapeDtypeStruct((BH, L, Dh), jnp.bfloat16),
        compiler_params=pltpu.CompilerParams(dimension_semantics=("parallel",)),
    )(q, k, v)


# ----------------------------- kernel 3: out proj + residual + LayerNorm -----------------------------
def _out_ln_kernel(ctx_ref, w_ref, b_ref, x_ref, g_ref, beta_ref, o_ref):
    h = jnp.dot(ctx_ref[...], w_ref[...], preferred_element_type=jnp.float32)
    h = h + b_ref[...] + x_ref[...]                      # bias + residual in f32
    mean = jnp.mean(h, axis=-1, keepdims=True)
    c = h - mean
    var = jnp.mean(c * c, axis=-1, keepdims=True)        # biased var, like torch LN
    o_ref[...] = (c * jax.lax.rsqrt(var + 1e-5) * g_ref[...] + beta_ref[...]).astype(o_ref.dtype)


def out_proj_residual_layernorm(ctx2d, wo_t, bo, x2d, gamma, beta):
    N, D = ctx2d.shape
    tm = _row_tile(N)
    row_spec = pl.BlockSpec((tm, D), lambda i: (i, 0))
    def full(shape):
        return pl.BlockSpec(shape, lambda i: (0, 0))
    return pl.pallas_call(
        _out_ln_kernel,
        grid=(pl.cdiv(N, tm),),
        in_specs=[row_spec, full((D, D)), full((1, D)), row_spec, full((1, D)), full((1, D))],
        out_specs=row_spec,
        out_shape=jax.ShapeDtypeStruct((N, D), jnp.float32),
        compiler_params=pltpu.CompilerParams(dimension_semantics=("parallel",)),
    )(ctx2d, wo_t, bo, x2d, gamma, beta)


# ----------------------------- weight packing (done ONCE, outside the forward) -----------------------------
def pack_params(params):
    D = params["wq"].shape[0]
    wqkv_t = jnp.concatenate(
        [params["wq"].T, params["wk"].T, params["wv"].T], axis=1).astype(jnp.bfloat16)
    bqkv = jnp.concatenate(
        [params["bq"], params["bk"], params["bv"]]).reshape(1, 3 * D).astype(jnp.float32)
    return {
        "wqkv_t": wqkv_t,                                       # (D, 3D) bf16
        "bqkv": bqkv,                                           # (1, 3D) f32
        "wo_t": params["wo"].T.astype(jnp.bfloat16),            # (D, D) bf16
        "bo": params["bo"].reshape(1, D).astype(jnp.float32),
        "gamma": params["ln_gamma"].reshape(1, D).astype(jnp.float32),
        "beta": params["ln_beta"].reshape(1, D).astype(jnp.float32),
    }


# ----------------------------- full module -----------------------------
@functools.partial(jax.jit, static_argnames=("num_head",))
def multi_head_attention_forward(x, packed, num_head):
    B, L, D = x.shape
    dim_head = D // num_head

    x2d = x.reshape(B * L, D)
    q2d, k2d, v2d = qkv_projection(x2d.astype(jnp.bfloat16),
                                   packed["wqkv_t"], packed["bqkv"])

    # torch: Q.view(batch_size * num_head, -1, dim_head) — contiguous row-major
    # regroup; free metadata reshape (no HBM copy, no transpose).
    Q = q2d.reshape(B * num_head, -1, dim_head)
    K = k2d.reshape(B * num_head, -1, dim_head)
    V = v2d.reshape(B * num_head, -1, dim_head)

    context = scaled_dot_product_attention(Q, K, V, float(dim_head) ** (-0.5))

    # torch: context.view(batch_size, -1, dim_head * num_head) — also free.
    ctx2d = context.reshape(B * L, D)

    out2d = out_proj_residual_layernorm(
        ctx2d, packed["wo_t"], packed["bo"], x2d, packed["gamma"], packed["beta"])
    return out2d.reshape(B, L, D)


# ----------------------------- pure-JAX f32 reference -----------------------------
def _reference_forward(x, params, num_head):
    B, L, D = x.shape
    dim_head = D // num_head
    q = x @ params["wq"].T + params["bq"]
    k = x @ params["wk"].T + params["bk"]
    v = x @ params["wv"].T + params["bv"]
    Q = q.reshape(B * num_head, -1, dim_head)
    K = k.reshape(B * num_head, -1, dim_head)
    V = v.reshape(B * num_head, -1, dim_head)
    scale = float(dim_head) ** (-0.5)
    att = jnp.einsum("bld,bmd->blm", Q, K) * scale
    att = jax.nn.softmax(att, axis=-1)
    ctx = jnp.einsum("blm,bmd->bld", att, V)
    ctx = ctx.reshape(B, L, D)
    out = ctx @ params["wo"].T + params["bo"] + x
    mean = jnp.mean(out, axis=-1, keepdims=True)
    var = jnp.mean((out - mean) ** 2, axis=-1, keepdims=True)
    return (out - mean) * jax.lax.rsqrt(var + 1e-5) * params["ln_gamma"] + params["ln_beta"]


if __name__ == "__main__":
    # small shapes consistent with the module's forward (D multiple of 128 so the
    # lane dim is MXU/vreg aligned; Dh=32, G=4 heads per attention grid step).
    B, L, dim_model, num_head = 2, 8, 128, 4

    key = jax.random.PRNGKey(0)
    keys = jax.random.split(key, 10)

    def init_linear(kw, kb, out_dim, in_dim):
        bound = 1.0 / (in_dim ** 0.5)
        w = jax.random.uniform(kw, (out_dim, in_dim), jnp.float32, -bound, bound)
        b = jax.random.uniform(kb, (out_dim,), jnp.float32, -bound, bound)
        return w, b

    wq, bq = init_linear(keys[0], keys[1], dim_model, dim_model)
    wk, bk = init_linear(keys[2], keys[3], dim_model, dim_model)
    wv, bv = init_linear(keys[4], keys[5], dim_model, dim_model)
    wo, bo = init_linear(keys[6], keys[7], dim_model, dim_model)

    params = {
        "wq": wq, "bq": bq,
        "wk": wk, "bk": bk,
        "wv": wv, "bv": bv,
        "wo": wo, "bo": bo,
        "ln_gamma": jnp.ones((dim_model,), jnp.float32),
        "ln_beta": jnp.zeros((dim_model,), jnp.float32),
    }

    packed = pack_params(params)   # one-time pre-transpose / pre-pack of weights

    x = jax.random.normal(keys[8], (B, L, dim_model), jnp.float32)

    out = multi_head_attention_forward(x, packed, num_head)
    out = jax.block_until_ready(out)

    ref = _reference_forward(x, params, num_head)
    assert out.shape == (B, L, dim_model)
    # bf16 MXU inputs with f32 accumulation -> compare against f32 ref at bf16-level tolerance
    assert jnp.allclose(out, ref, atol=3e-2, rtol=3e-2), "mismatch vs reference"

    print("KERNEL_OK")
</pallas_src>

<mosaic_0001>
module attributes {stable_mosaic.version = 11 : i64} {
  func.func @_qkv_kernel(%arg0: i32, %arg1: memref<16x128xbf16, #tpu.memory_space<vmem>>, %arg2: memref<128x384xbf16, #tpu.memory_space<vmem>>, %arg3: memref<1x384xf32, #tpu.memory_space<vmem>>, %arg4: memref<16x128xbf16, #tpu.memory_space<vmem>>, %arg5: memref<16x128xbf16, #tpu.memory_space<vmem>>, %arg6: memref<16x128xbf16, #tpu.memory_space<vmem>>) attributes {dimension_semantics = [#tpu.dimension_semantics<parallel>], iteration_bounds = array<i64: 1>, scalar_prefetch = 0 : i64, scratch_operands = 0 : i64, tpu.core_type = #tpu.core_type<tc>, window_params = [{transform_indices = @transform_0, window_bounds = array<i64: 16, 128>}, {pipeline_mode = #tpu.pipeline_mode<synchronous>, transform_indices = @transform_1, window_bounds = array<i64: 128, 384>}, {pipeline_mode = #tpu.pipeline_mode<synchronous>, transform_indices = @transform_2, window_bounds = array<i64: 1, 384>}, {transform_indices = @transform_3, window_bounds = array<i64: 16, 128>}, {transform_indices = @transform_4, window_bounds = array<i64: 16, 128>}, {transform_indices = @transform_5, window_bounds = array<i64: 16, 128>}]} {
    %c0 = arith.constant 0 : index
    %c0_0 = arith.constant 0 : index
    %0 = vector.load %arg1[%c0, %c0_0] : memref<16x128xbf16, #tpu.memory_space<vmem>>, vector<16x128xbf16>
    %c0_1 = arith.constant 0 : index
    %c0_2 = arith.constant 0 : index
    %1 = vector.load %arg2[%c0_1, %c0_2] : memref<128x384xbf16, #tpu.memory_space<vmem>>, vector<128x384xbf16>
    %cst = arith.constant dense<0.000000e+00> : vector<16x384xf32>
    %2 = tpu.matmul %0, %1, %cst {dimension_numbers = #tpu.dot_dimension_numbers<[1], [0], [0], [1], [0, 0, 1, 1], [], []>} : vector<16x128xbf16>, vector<128x384xbf16>, vector<16x384xf32> -> vector<16x384xf32>
    %c0_3 = arith.constant 0 : index
    %c0_4 = arith.constant 0 : index
    %3 = vector.load %arg3[%c0_3, %c0_4] : memref<1x384xf32, #tpu.memory_space<vmem>>, vector<1x384xf32>
    %4 = vector.broadcast %3 : vector<1x384xf32> to vector<16x384xf32>
    %5 = arith.addf %2, %4 : vector<16x384xf32>
    %6 = vector.extract_strided_slice %5 {offsets = [0, 0], sizes = [16, 128], strides = [1, 1]} : vector<16x384xf32> to vector<16x128xf32>
    %7 = arith.truncf %6 : vector<16x128xf32> to vector<16x128xbf16>
    %c0_5 = arith.constant 0 : index
    %c0_6 = arith.constant 0 : index
    %8 = vector.load %arg4[%c0_5, %c0_6] : memref<16x128xbf16, #tpu.memory_space<vmem>>, vector<16x128xbf16>
    tpu.vector_store %arg4[%c0_5, %c0_6], %7 {strides = array<i32>} : memref<16x128xbf16, #tpu.memory_space<vmem>>, vector<16x128xbf16>,
    %9 = vector.extract_strided_slice %5 {offsets = [0, 128], sizes = [16, 128], strides = [1, 1]} : vector<16x384xf32> to vector<16x128xf32>
    %10 = arith.truncf %9 : vector<16x128xf32> to vector<16x128xbf16>
    %c0_7 = arith.constant 0 : index
    %c0_8 = arith.constant 0 : index
    %11 = vector.load %arg5[%c0_7, %c0_8] : memref<16x128xbf16, #tpu.memory_space<vmem>>, vector<16x128xbf16>
    tpu.vector_store %arg5[%c0_7, %c0_8], %10 {strides = array<i32>} : memref<16x128xbf16, #tpu.memory_space<vmem>>, vector<16x128xbf16>,
    %12 = vector.extract_strided_slice %5 {offsets = [0, 256], sizes = [16, 128], strides = [1, 1]} : vector<16x384xf32> to vector<16x128xf32>
    %13 = arith.truncf %12 : vector<16x128xf32> to vector<16x128xbf16>
    %c0_9 = arith.constant 0 : index
    %c0_10 = arith.constant 0 : index
    %14 = vector.load %arg6[%c0_9, %c0_10] : memref<16x128xbf16, #tpu.memory_space<vmem>>, vector<16x128xbf16>
    tpu.vector_store %arg6[%c0_9, %c0_10], %13 {strides = array<i32>} : memref<16x128xbf16, #tpu.memory_space<vmem>>, vector<16x128xbf16>,
    return
  }
  func.func @transform_0(%arg0: i32) -> (i32, i32) {
    %c0_i32 = arith.constant 0 : i32
    %c0_i32_0 = arith.constant 0 : i32
    return %arg0, %c0_i32 : i32, i32
  }
  func.func @transform_1(%arg0: i32) -> (i32, i32) {
    %c0_i32 = arith.constant 0 : i32
    %c0_i32_0 = arith.constant 0 : i32
    %c0_i32_1 = arith.constant 0 : i32
    return %c0_i32, %c0_i32_0 : i32, i32
  }
  func.func @transform_2(%arg0: i32) -> (i32, i32) {
    %c0_i32 = arith.constant 0 : i32
    %c0_i32_0 = arith.constant 0 : i32
    %c0_i32_1 = arith.constant 0 : i32
    return %c0_i32, %c0_i32_0 : i32, i32
  }
  func.func @transform_3(%arg0: i32) -> (i32, i32) {
    %c0_i32 = arith.constant 0 : i32
    %c0_i32_0 = arith.constant 0 : i32
    return %arg0, %c0_i32 : i32, i32
  }
  func.func @transform_4(%arg0: i32) -> (i32, i32) {
    %c0_i32 = arith.constant 0 : i32
    %c0_i32_0 = arith.constant 0 : i32
    return %arg0, %c0_i32 : i32, i32
  }
  func.func @transform_5(%arg0: i32) -> (i32, i32) {
    %c0_i32 = arith.constant 0 : i32
    %c0_i32_0 = arith.constant 0 : i32
    return %arg0, %c0_i32 : i32, i32
  }
}

module attributes {stable_mosaic.version = 11 : i64} {
  func.func @_attn_kernel(%arg0: i32, %arg1: memref<4x8x32xbf16, #tpu.memory_space<vmem>>, %arg2: memref<4x8x32xbf16, #tpu.memory_space<vmem>>, %arg3: memref<4x8x32xbf16, #tpu.memory_space<vmem>>, %arg4: memref<4x8x32xbf16, #tpu.memory_space<vmem>>) attributes {dimension_semantics = [#tpu.dimension_semantics<parallel>], iteration_bounds = array<i64: 2>, scalar_prefetch = 0 : i64, scratch_operands = 0 : i64, tpu.core_type = #tpu.core_type<tc>, window_params = [{transform_indices = @transform_0, window_bounds = array<i64: 4, 8, 32>}, {transform_indices = @transform_1, window_bounds = array<i64: 4, 8, 32>}, {transform_indices = @transform_2, window_bounds = array<i64: 4, 8, 32>}, {transform_indices = @transform_3, window_bounds = array<i64: 4, 8, 32>}]} {
    %c0 = arith.constant 0 : index
    %c0_0 = arith.constant 0 : index
    %c0_1 = arith.constant 0 : index
    %0 = vector.load %arg1[%c0, %c0_0, %c0_1] : memref<4x8x32xbf16, #tpu.memory_space<vmem>>, vector<4x8x32xbf16>
    %cst = arith.constant 1.767580e-01 : bf16
    %1 = vector.broadcast %cst : bf16 to vector<4x8x32xbf16>
    %2 = arith.mulf %0, %1 : vector<4x8x32xbf16>
    %c0_2 = arith.constant 0 : index
    %c0_3 = arith.constant 0 : index
    %c0_4 = arith.constant 0 : index
    %3 = vector.load %arg2[%c0_2, %c0_3, %c0_4] : memref<4x8x32xbf16, #tpu.memory_space<vmem>>, vector<4x8x32xbf16>
    %c0_5 = arith.constant 0 : index
    %c0_6 = arith.constant 0 : index
    %c0_7 = arith.constant 0 : index
    %4 = vector.load %arg3[%c0_5, %c0_6, %c0_7] : memref<4x8x32xbf16, #tpu.memory_space<vmem>>, vector<4x8x32xbf16>
    "tpu.trace_start"() <{level = 10 : i32, message = "gqd,gkd->gqk"}> : () -> ()
    %cst_8 = arith.constant dense<0.000000e+00> : vector<4x8x8xf32>
    %5 = tpu.matmul %2, %3, %cst_8 {dimension_numbers = #tpu.dot_dimension_numbers<[2], [2], [1], [1], [0, 0, 0, 1, 1, 1], [0], [0]>} : vector<4x8x32xbf16>, vector<4x8x32xbf16>, vector<4x8x8xf32> -> vector<4x8x8xf32>
    "tpu.trace_stop"() : () -> ()
    %cst_9 = arith.constant dense<0xFF800000> : vector<4x8xf32>
    %6 = vector.multi_reduction <maximumf>, %5, %cst_9 [2] : vector<4x8x8xf32> to vector<4x8xf32>
    %7 = vector.shape_cast %6 : vector<4x8xf32> to vector<4x8x1xf32>
    %8 = vector.broadcast %7 : vector<4x8x1xf32> to vector<4x8x8xf32>
    %9 = arith.subf %5, %8 : vector<4x8x8xf32>
    %10 = math.exp %9 : vector<4x8x8xf32>
    %cst_10 = arith.constant dense<0.000000e+00> : vector<4x8xf32>
    %11 = vector.multi_reduction <add>, %10, %cst_10 [2] : vector<4x8x8xf32> to vector<4x8xf32>
    %12 = vector.shape_cast %11 : vector<4x8xf32> to vector<4x8x1xf32>
    %13 = tpu.reciprocal %12 {approx = true} : vector<4x8x1xf32> -> vector<4x8x1xf32>
    %14 = arith.truncf %10 : vector<4x8x8xf32> to vector<4x8x8xbf16>
    "tpu.trace_start"() <{level = 10 : i32, message = "gqk,gkd->gqd"}> : () -> ()
    %cst_11 = arith.constant dense<0.000000e+00> : vector<4x8x32xf32>
    %15 = tpu.matmul %14, %4, %cst_11 {dimension_numbers = #tpu.dot_dimension_numbers<[2], [1], [1], [2], [0, 0, 0, 1, 1, 2], [0], [0]>} : vector<4x8x8xbf16>, vector<4x8x32xbf16>, vector<4x8x32xf32> -> vector<4x8x32xf32>
    "tpu.trace_stop"() : () -> ()
    %16 = vector.broadcast %13 : vector<4x8x1xf32> to vector<4x8x32xf32>
    %17 = arith.mulf %15, %16 : vector<4x8x32xf32>
    %18 = arith.truncf %17 : vector<4x8x32xf32> to vector<4x8x32xbf16>
    %c0_12 = arith.constant 0 : index
    %c0_13 = arith.constant 0 : index
    %c0_14 = arith.constant 0 : index
    %19 = vector.load %arg4[%c0_12, %c0_13, %c0_14] : memref<4x8x32xbf16, #tpu.memory_space<vmem>>, vector<4x8x32xbf16>
    tpu.vector_store %arg4[%c0_12, %c0_13, %c0_14], %18 {strides = array<i32>} : memref<4x8x32xbf16, #tpu.memory_space<vmem>>, vector<4x8x32xbf16>,
    return
  }
  func.func @transform_0(%arg0: i32) -> (i32, i32, i32) {
    %c0_i32 = arith.constant 0 : i32
    %c0_i32_0 = arith.constant 0 : i32
    %c0_i32_1 = arith.constant 0 : i32
    return %arg0, %c0_i32, %c0_i32_0 : i32, i32, i32
  }
  func.func @transform_1(%arg0: i32) -> (i32, i32, i32) {
    %c0_i32 = arith.constant 0 : i32
    %c0_i32_0 = arith.constant 0 : i32
    %c0_i32_1 = arith.constant 0 : i32
    return %arg0, %c0_i32, %c0_i32_0 : i32, i32, i32
  }
  func.func @transform_2(%arg0: i32) -> (i32, i32, i32) {
    %c0_i32 = arith.constant 0 : i32
    %c0_i32_0 = arith.constant 0 : i32
    %c0_i32_1 = arith.constant 0 : i32
    return %arg0, %c0_i32, %c0_i32_0 : i32, i32, i32
  }
  func.func @transform_3(%arg0: i32) -> (i32, i32, i32) {
    %c0_i32 = arith.constant 0 : i32
    %c0_i32_0 = arith.constant 0 : i32
    %c0_i32_1 = arith.constant 0 : i32
    return %arg0, %c0_i32, %c0_i32_0 : i32, i32, i32
  }
}

module attributes {stable_mosaic.version = 11 : i64} {
  func.func @_out_ln_kernel(%arg0: i32, %arg1: memref<16x128xbf16, #tpu.memory_space<vmem>>, %arg2: memref<128x128xbf16, #tpu.memory_space<vmem>>, %arg3: memref<1x128xf32, #tpu.memory_space<vmem>>, %arg4: memref<16x128xf32, #tpu.memory_space<vmem>>, %arg5: memref<1x128xf32, #tpu.memory_space<vmem>>, %arg6: memref<1x128xf32, #tpu.memory_space<vmem>>, %arg7: memref<16x128xf32, #tpu.memory_space<vmem>>) attributes {dimension_semantics = [#tpu.dimension_semantics<parallel>], iteration_bounds = array<i64: 1>, scalar_prefetch = 0 : i64, scratch_operands = 0 : i64, tpu.core_type = #tpu.core_type<tc>, window_params = [{transform_indices = @transform_0, window_bounds = array<i64: 16, 128>}, {pipeline_mode = #tpu.pipeline_mode<synchronous>, transform_indices = @transform_1, window_bounds = array<i64: 128, 128>}, {pipeline_mode = #tpu.pipeline_mode<synchronous>, transform_indices = @transform_2, window_bounds = array<i64: 1, 128>}, {transform_indices = @transform_3, window_bounds = array<i64: 16, 128>}, {pipeline_mode = #tpu.pipeline_mode<synchronous>, transform_indices = @transform_4, window_bounds = array<i64: 1, 128>}, {pipeline_mode = #tpu.pipeline_mode<synchronous>, transform_indices = @transform_5, window_bounds = array<i64: 1, 128>}, {transform_indices = @transform_6, window_bounds = array<i64: 16, 128>}]} {
    %c0 = arith.constant 0 : index
    %c0_0 = arith.constant 0 : index
    %0 = vector.load %arg1[%c0, %c0_0] : memref<16x128xbf16, #tpu.memory_space<vmem>>, vector<16x128xbf16>
    %c0_1 = arith.constant 0 : index
    %c0_2 = arith.constant 0 : index
    %1 = vector.load %arg2[%c0_1, %c0_2] : memref<128x128xbf16, #tpu.memory_space<vmem>>, vector<128x128xbf16>
    %cst = arith.constant dense<0.000000e+00> : vector<16x128xf32>
    %2 = tpu.matmul %0, %1, %cst {dimension_numbers = #tpu.dot_dimension_numbers<[1], [0], [0], [1], [0, 0, 1, 1], [], []>} : vector<16x128xbf16>, vector<128x128xbf16>, vector<16x128xf32> -> vector<16x128xf32>
    %c0_3 = arith.constant 0 : index
    %c0_4 = arith.constant 0 : index
    %3 = vector.load %arg3[%c0_3, %c0_4] : memref<1x128xf32, #tpu.memory_space<vmem>>, vector<1x128xf32>
    %4 = vector.broadcast %3 : vector<1x128xf32> to vector<16x128xf32>
    %5 = arith.addf %2, %4 : vector<16x128xf32>
    %c0_5 = arith.constant 0 : index
    %c0_6 = arith.constant 0 : index
    %6 = vector.load %arg4[%c0_5, %c0_6] : memref<16x128xf32, #tpu.memory_space<vmem>>, vector<16x128xf32>
    %7 = arith.addf %5, %6 : vector<16x128xf32>
    %cst_7 = arith.constant dense<0.000000e+00> : vector<16xf32>
    %8 = vector.multi_reduction <add>, %7, %cst_7 [1] : vector<16x128xf32> to vector<16xf32>
    %9 = vector.shape_cast %8 : vector<16xf32> to vector<16x1xf32>
    %cst_8 = arith.constant 1.280000e+02 : f32
    %10 = vector.broadcast %cst_8 : f32 to vector<16x1xf32>
    %11 = arith.divf %9, %10 : vector<16x1xf32>
    %12 = vector.broadcast %11 : vector<16x1xf32> to vector<16x128xf32>
    %13 = arith.subf %7, %12 : vector<16x128xf32>
    %14 = arith.mulf %13, %13 : vector<16x128xf32>
    %cst_9 = arith.constant dense<0.000000e+00> : vector<16xf32>
    %15 = vector.multi_reduction <add>, %14, %cst_9 [1] : vector<16x128xf32> to vector<16xf32>
    %16 = vector.shape_cast %15 : vector<16xf32> to vector<16x1xf32>
    %cst_10 = arith.constant 1.280000e+02 : f32
    %17 = vector.broadcast %cst_10 : f32 to vector<16x1xf32>
    %18 = arith.divf %16, %17 : vector<16x1xf32>
    %cst_11 = arith.constant 9.99999974E-6 : f32
    %19 = vector.broadcast %cst_11 : f32 to vector<16x1xf32>
    %20 = arith.addf %18, %19 : vector<16x1xf32>
    %21 = math.rsqrt %20 : vector<16x1xf32>
    %22 = vector.broadcast %21 : vector<16x1xf32> to vector<16x128xf32>
    %23 = arith.mulf %13, %22 : vector<16x128xf32>
    %c0_12 = arith.constant 0 : index
    %c0_13 = arith.constant 0 : index
    %24 = vector.load %arg5[%c0_12, %c0_13] : memref<1x128xf32, #tpu.memory_space<vmem>>, vector<1x128xf32>
    %25 = vector.broadcast %24 : vector<1x128xf32> to vector<16x128xf32>
    %26 = arith.mulf %23, %25 : vector<16x128xf32>
    %c0_14 = arith.constant 0 : index
    %c0_15 = arith.constant 0 : index
    %27 = vector.load %arg6[%c0_14, %c0_15] : memref<1x128xf32, #tpu.memory_space<vmem>>, vector<1x128xf32>
    %28 = vector.broadcast %27 : vector<1x128xf32> to vector<16x128xf32>
    %29 = arith.addf %26, %28 : vector<16x128xf32>
    %c0_16 = arith.constant 0 : index
    %c0_17 = arith.constant 0 : index
    %30 = vector.load %arg7[%c0_16, %c0_17] : memref<16x128xf32, #tpu.memory_space<vmem>>, vector<16x128xf32>
    tpu.vector_store %arg7[%c0_16, %c0_17], %29 {strides = array<i32>} : memref<16x128xf32, #tpu.memory_space<vmem>>, vector<16x128xf32>,
    return
  }
  func.func @transform_0(%arg0: i32) -> (i32, i32) {
    %c0_i32 = arith.constant 0 : i32
    %c0_i32_0 = arith.constant 0 : i32
    return %arg0, %c0_i32 : i32, i32
  }
  func.func @transform_1(%arg0: i32) -> (i32, i32) {
    %c0_i32 = arith.constant 0 : i32
    %c0_i32_0 = arith.constant 0 : i32
    %c0_i32_1 = arith.constant 0 : i32
    return %c0_i32, %c0_i32_0 : i32, i32
  }
  func.func @transform_2(%arg0: i32) -> (i32, i32) {
    %c0_i32 = arith.constant 0 : i32
    %c0_i32_0 = arith.constant 0 : i32
    %c0_i32_1 = arith.constant 0 : i32
    return %c0_i32, %c0_i32_0 : i32, i32
  }
  func.func @transform_3(%arg0: i32) -> (i32, i32) {
    %c0_i32 = arith.constant 0 : i32
    %c0_i32_0 = arith.constant 0 : i32
    return %arg0, %c0_i32 : i32, i32
  }
  func.func @transform_4(%arg0: i32) -> (i32, i32) {
    %c0_i32 = arith.constant 0 : i32
    %c0_i32_0 = arith.constant 0 : i32
    %c0_i32_1 = arith.constant 0 : i32
    return %c0_i32, %c0_i32_0 : i32, i32
  }
  func.func @transform_5(%arg0: i32) -> (i32, i32) {
    %c0_i32 = arith.constant 0 : i32
    %c0_i32_0 = arith.constant 0 : i32
    %c0_i32_1 = arith.constant 0 : i32
    return %c0_i32, %c0_i32_0 : i32, i32
  }
  func.func @transform_6(%arg0: i32) -> (i32, i32) {
    %c0_i32 = arith.constant 0 : i32
    %c0_i32_0 = arith.constant 0 : i32
    return %arg0, %c0_i32 : i32, i32
  }
}

</mosaic_0001>

<bundles_post_ra>
// kernel: multi_head_attention_forward.3
= control target key start
LH: loop header
LB: loop body
LE: loop exit
PB: predicated region body
PF: predicated region fallthrough
CT: control target
= control target key end

     0   :  { %11 = vsyncpa [#allocation3], 0  ;;  %s486_s18 = smov [#allocation2]   ;;  %s540_s0 = inlined_call_operand.vmem [shape: bf16[16,128], index: 0, kind: input, shape index: {}]   ;;  %s541_s1 = inlined_call_operand.hbm [shape: bf16[128,384], index: 1, kind: input, shape index: {}]   ;;  %s542_s2 = inlined_call_operand.vmem [shape: f32[1,384], index: 2, kind: input, shape index: {}]   ;;  %s543_s3 = inlined_call_operand.vmem [shape: bf16[16,128], index: 3, kind: output, shape index: {0}]   ;;  %s544_s4 = inlined_call_operand.vmem [shape: bf16[16,128], index: 4, kind: output, shape index: {1}]   ;;  %s545_s5 = inlined_call_operand.vmem [shape: bf16[16,128], index: 5, kind: output, shape index: {2}]  }
   0x1   :  { %s19_s19 = sshll.u32 %s486_s18, 4  ;;  %s20_s19 = int_to_ptr.vmem [resolvable:$true] %s19_s19 }
   0x2   :  { %s472_s20 = scalar_lea.vmem %s20_s19, 3072  ;;  %p477_p1 = scmp.lt.s32.totalorder %s20_s19, %s20_s19 }
   0x3   :  { %p473_p0 = scmp.ne.s32.totalorder %s20_s19, %s472_s20  ;;  %p478_p2 = scmp.lt.s32.totalorder %s472_s20, %s472_s20 }
   0x5   :  { %p479_p3 = por %p478_p2, %p477_p1 }
   0x7   :  { %p480_p4 = pnand %p479_p3, %p473_p0 }
   0x9   :  { %483 = shalt.err (!%p480_p4)
}
   0xa   :  { %s487_s21 = smov 192   ;;  %s488_s22 = smov 12  }
   0xb   :  { %25 = dma.hbm_to_vmem [thread:$0]  %s541_s1, 3072, %s20_s19, [#allocation3], %s487_s21, %s487_s21, %s488_s22  }
   0xc   :  { %484 = dma.done.wait [#allocation3], 3072  }
   0xd   :  { %485 = vsyncadd [#allocation3], 4294964224  ;;  %v489_v0 = vmov 0.0   ;;  %vm490_vm0 = vmmov 0   ;;  %v491_v1 = vmov 0   ;;  %v463_v26 = vld [vmem:[%s540_s0] sm:$0xff]   ;;  %v68_v27 = vlaneseq }
   0xe   :  { %405 = vmatprep.subr.bf16.mxu1 %v489_v0  ;;  %421 = vmatprep.mubr.msk.bf16.mxu1 %vm490_vm0, %v489_v0  ;;  %v431_v2 = vld [vmem:[#allocation2 + $0xac] ss:$12 sps:$4 sm:$0xff]   ;;  %v433_v3 = vld [vmem:[#allocation2 + $0xb0] ss:$12 sps:$4 sm:$0xff]   ;;  %v434_v4 = vld [vmem:[#allocation2 + $0xa8] ss:$12 sps:$4 sm:$0xff]  }
   0xf   :  { %249 = vmatprep.mubr.bf16.mxu0 %v491_v1  ;;  %217 = vmatprep.subr.bf16.mxu0 %v431_v2  ;;  %v435_v5 = vld [vmem:[#allocation2 + $0x94] ss:$12 sps:$4 sm:$0xff]   ;;  %v437_v6 = vld [vmem:[#allocation2 + $0x98] ss:$12 sps:$4 sm:$0xff]   ;;  %v438_v7 = vld [vmem:[#allocation2 + $0x90] ss:$12 sps:$4 sm:$0xff]  }
  0x10   :  { %406 = vmatpush3.bf16.msra.mxu1 %v433_v3  ;;  %218 = vmatpush1.bf16.msra.mxu0 %v434_v4  ;;  %v439_v8 = vld [vmem:[#allocation2 + $0x7c] ss:$12 sps:$4 sm:$0xff]   ;;  %v441_v9 = vld [vmem:[#allocation2 + $0x80] ss:$12 sps:$4 sm:$0xff]   ;;  %v442_v10 = vld [vmem:[#allocation2 + $0x78] ss:$12 sps:$4 sm:$0xff]  }
  0x11   :  { %407 = vmatprep.subr.bf16.mxu1 %v489_v0  ;;  %219 = vmatprep.subr.bf16.mxu0 %v435_v5  ;;  %v443_v11 = vld [vmem:[#allocation2 + $0x64] ss:$12 sps:$4 sm:$0xff]   ;;  %v445_v12 = vld [vmem:[#allocation2 + $0x68] ss:$12 sps:$4 sm:$0xff]   ;;  %v446_v13 = vld [vmem:[#allocation2 + $0x60] ss:$12 sps:$4 sm:$0xff]  }
  0x12   :  { %v447_v14 = vld [vmem:[#allocation2 + $0x4c] ss:$12 sps:$4 sm:$0xff]   ;;  %v449_v15 = vld [vmem:[#allocation2 + $0x50] ss:$12 sps:$4 sm:$0xff]   ;;  %v450_v16 = vld [vmem:[#allocation2 + $0x48] ss:$12 sps:$4 sm:$0xff]  }
  0x13   :  { %v451_v17 = vld [vmem:[#allocation2 + $0x34] ss:$12 sps:$4 sm:$0xff]   ;;  %v453_v18 = vld [vmem:[#allocation2 + $0x38] ss:$12 sps:$4 sm:$0xff]   ;;  %v454_v19 = vld [vmem:[#allocation2 + $0x30] ss:$12 sps:$4 sm:$0xff]  }
  0x14   :  { %408 = vmatpush3.bf16.msra.mxu1 %v437_v6  ;;  %220 = vmatpush1.bf16.msra.mxu0 %v438_v7  ;;  %v455_v20 = vld [vmem:[#allocation2 + $0x1c] ss:$12 sps:$4 sm:$0xff]   ;;  %v457_v21 = vld [vmem:[#allocation2 + $0x20] ss:$12 sps:$4 sm:$0xff]   ;;  %v458_v22 = vld [vmem:[#allocation2 + $0x18] ss:$12 sps:$4 sm:$0xff]  }
  0x15   :  { %409 = vmatprep.subr.bf16.mxu1 %v489_v0  ;;  %221 = vmatprep.subr.bf16.mxu0 %v439_v8  ;;  %v459_v23 = vld [vmem:[#allocation2 + $0x4] ss:$12 sps:$4 sm:$0xff]   ;;  %v461_v24 = vld [vmem:[#allocation2 + $0x8] ss:$12 sps:$4 sm:$0xff]   ;;  %v462_v25 = vld [vmem:[#allocation2] ss:$12 sps:$4 sm:$0xff]  }
  0x16   :  { %v69_v28 = vshrl.u32 %v68_v27, 7  ;;  %v66_v30 = vld [vmem:[%s542_s2] sm:$0x7] }
  0x18   :  { %410 = vmatpush3.bf16.msra.mxu1 %v441_v9  ;;  %222 = vmatpush1.bf16.msra.mxu0 %v442_v10  ;;  %v78_v29 = vsub.s32 2, %v69_v28  ;;  %v70_v31 = vsub.s32 0, %v69_v28  ;;  %v74_v34 = vsub.s32 1, %v69_v28 }
  0x19   :  { %411 = vmatprep.subr.bf16.mxu1 %v489_v0  ;;  %223 = vmatprep.subr.bf16.mxu0 %v443_v11 }
  0x1a   :  { %v79_v32 = vrot.slane %v66_v30, %v78_v29  ;;  %v71_v36 = vrot.slane %v66_v30, %v70_v31  ;;  %v75_v40 = vrot.slane %v66_v30, %v74_v34 }
  0x1c   :  { %412 = vmatpush3.bf16.msra.mxu1 %v445_v12  ;;  %224 = vmatpush1.bf16.msra.mxu0 %v446_v13 }
  0x1d   :  { %413 = vmatprep.subr.bf16.mxu1 %v489_v0  ;;  %225 = vmatprep.subr.bf16.mxu0 %v447_v14 }
  0x20   :  { %414 = vmatpush3.bf16.msra.mxu1 %v449_v15  ;;  %226 = vmatpush1.bf16.msra.mxu0 %v450_v16 }
  0x21   :  { %415 = vmatprep.subr.bf16.mxu1 %v489_v0  ;;  %227 = vmatprep.subr.bf16.mxu0 %v451_v17 }
  0x24   :  { %416 = vmatpush3.bf16.msra.mxu1 %v453_v18  ;;  %228 = vmatpush1.bf16.msra.mxu0 %v454_v19 }
  0x25   :  { %417 = vmatprep.subr.bf16.mxu1 %v489_v0  ;;  %229 = vmatprep.subr.bf16.mxu0 %v455_v20 }
  0x28   :  { %418 = vmatpush3.bf16.msra.mxu1 %v457_v21  ;;  %230 = vmatpush1.bf16.msra.mxu0 %v458_v22 }
  0x29   :  { %419 = vmatprep.subr.bf16.mxu1 %v489_v0  ;;  %231 = vmatprep.subr.bf16.mxu0 %v459_v23 }
  0x2c   :  { %420 = vmatpush3.bf16.msra.mxu1 %v461_v24  ;;  %232 = vmatpush1.bf16.msra.mxu0 %v462_v25 }
  0x2f   :  { %422 = vmatmul.mubr.bf16.vlgmr.msra.gmra.mxu1 %v463_v26  ;;  %250 = vmatmul.mubr.bf16.vlgmr.msra.gmra.mxu0 %v463_v26 }
  0xef   :  { %v294_v33 = vpop.f32.mrf.mxu1  ;;  %v251_v35 = vpop.f32.mrf.mxu0 }
  0xf0   :  { %v295_v38 = vadd.f32 %v294_v33, %v79_v32  ;;  %v252_v44 = vadd.f32 %v251_v35, %v71_v36 }
  0xf1   :  { %v423_v37 = vpop.f32.mrf.mxu1  ;;  %v253_v39 = vpop.f32.mrf.mxu0 }
  0xf2   :  { %v254_v49 = vadd.f32 %v253_v39, %v75_v40 }
  0xf3   :  { %v297_v41 = vpop.f32.mrf.mxu1  ;;  %v255_v43 = vpop.f32.mrf.mxu0 }
  0xf4   :  { %v298_v42 = vadd.f32 %v297_v41, %v79_v32  ;;  %v256_v45 = vadd.f32 %v255_v43, %v71_v36 }
  0xf5   :  { %v424_v46 = vpop.f32.mrf.mxu1  ;;  %v257_v48 = vpop.f32.mrf.mxu0 }
  0xf6   :  { %v394_v47 = vpack.c.bf16 %v298_v42, %v295_v38  ;;  %v384_v50 = vpack.c.bf16 %v256_v45, %v252_v44  ;;  %v258_v51 = vadd.f32 %v257_v48, %v75_v40 }
  0xf8   :  { %395 = vst [vmem:[%s545_s5] sm:$0xff] %v394_v47   ;;  %385 = vst [vmem:[%s543_s3] sm:$0xff] %v384_v50   ;;  %v389_v52 = vpack.c.bf16 %v258_v51, %v254_v49 }
  0xfa   :  { %390 = vst [vmem:[%s544_s4] sm:$0xff] %v389_v52  }
  0xfb   :  { %343 = vsyncpa [#allocation3], 1 }

// kernel: multi_head_attention_forward.4
= control target key start
LH: loop header
LB: loop body
LE: loop exit
PB: predicated region body
PF: predicated region fallthrough
CT: control target
= control target key end

     0   :  { %s887_s12 = smov 0   ;;  %s964_s0 = inlined_call_operand.vmem [shape: bf16[8,8,32], index: 0, kind: input, shape index: {}]   ;;  %s965_s1 = inlined_call_operand.vmem [shape: bf16[8,8,32], index: 1, kind: input, shape index: {}]   ;;  %s966_s2 = inlined_call_operand.vmem [shape: bf16[8,8,32], index: 2, kind: input, shape index: {}]   ;;  %s967_s3 = inlined_call_operand.vmem [shape: bf16[8,8,32], index: 3, kind: output, shape index: {}]  }
   0x1 LB: > { %s744_s13 = sadd.s32 4294967295, %s863_s12   ;;  %p748_p0 = scmp.ge.s32.totalorder %s863_s12, 1  ;;  %s863_s12 = sphi %s887_s12, %s13_s12  }
   0x2   : > { %p160_p1 = scmp.lt.s32.totalorder %s863_s12, 3 }
   0x4   : > { %p161_p2 = pnand %p748_p0, %p160_p1 }
   0x5   : > { %s749_s14 = sshll.u32 (!%p161_p2), %s744_s13, 2 }
   0x6   : > { %164 = sbr.rel (%p161_p2) target bundleno = 586 (0x24a), region = 32  ;;  %p195_p3 = scmp.lt.s32.totalorder (!%p161_p2), %s749_s14, 7 }
   0xb   : > { %v865_v0 = vmov 0.0   ;;  %vm866_vm0 = vmmov 0   ;;  %s969_s14 = smov (!%p195_p3, %s749_s14), 7  ;;  %vm236_vm1 = vcmask 261120   ;;  %vm421_vm2 = vcmask 64512  }
   0xc   : > { %783 = vmatprep.subr.bf16.mxu0 %v865_v0  ;;  %789 = vmatprep.subr.bf16.mxu1 %v865_v0  ;;  %s901_s15 = sshll.u32 %s969_s14, 2  ;;  %vm469_vm3 = vcmask 1043456   ;;  %vm659_vm4 = vcmask 257024  }
   0xd   : > { %785 = vmatprep.mubr.msk.bf16.mxu0 %vm866_vm0, %v865_v0  ;;  %791 = vmatprep.mubr.msk.bf16.mxu1 %vm866_vm0, %v865_v0  ;;  %s204_s18 = scalar_lea.vmem %s965_s1, %s901_s15  ;;  %s198_s21 = scalar_lea.vmem %s964_s0, %s901_s15 }
   0xe   : > { %v228_v1 = vld [vmem:[%s204_s18] sm:$0xf]  ;;  %v229_v2 = vld [vmem:[%s204_s18 + $0x4] sm:$0xf]  ;;  %v230_v7 = vld [vmem:[%s204_s18 + $0x8] sm:$0xf]  ;;  %s210_s24 = scalar_lea.vmem %s966_s2, %s901_s15  ;;  %s216_s27 = scalar_lea.vmem %s967_s3, %s901_s15 }
   0xf   : > { %v241_v3 = vsel %vm236_vm1, %v228_v1, 0  ;;  %v287_v4 = vsel %vm236_vm1, %v229_v2, 0  ;;  %v220_v5 = vld [vmem:[%s198_s21] sm:$0xf]  ;;  %v221_v6 = vld [vmem:[%s198_s21 + $0x4] sm:$0xf] }
  0x10   : > { %784 = vmatpush3.bf16.xpose.msra.mxu0 %v241_v3  ;;  %790 = vmatpush3.bf16.xpose.msra.mxu1 %v287_v4  ;;  %v231_v8 = vld [vmem:[%s204_s18 + $0xc] sm:$0xf]  ;;  %v224_v9 = vmul.bf16 1043676725, %v220_v5  ;;  %v225_v10 = vmul.bf16 1043676725, %v221_v6 }
  0x11   : > { %795 = vmatprep.subr.bf16.mxu0 %v865_v0  ;;  %801 = vmatprep.subr.bf16.mxu1 %v865_v0  ;;  %v333_v11 = vsel %vm236_vm1, %v230_v7, 0  ;;  %v379_v12 = vsel %vm236_vm1, %v231_v8, 0  ;;  %v222_v13 = vld [vmem:[%s198_s21 + $0x8] sm:$0xf]  ;;  %v223_v14 = vld [vmem:[%s198_s21 + $0xc] sm:$0xf] }
  0x12   : > { %v226_v15 = vmul.bf16 1043676725, %v222_v13  ;;  %v227_v16 = vmul.bf16 1043676725, %v223_v14  ;;  %v232_v37 = vld [vmem:[%s210_s24] sm:$0xf] }
  0x13   : > { %v471_v38 = vsel %vm469_vm3, %v232_v37, 0  ;;  %v233_v39 = vld [vmem:[%s210_s24 + $0x4] sm:$0xf]  ;;  %v234_v41 = vld [vmem:[%s210_s24 + $0x8] sm:$0xf] }
  0x14   : > { %v517_v40 = vsel %vm469_vm3, %v233_v39, 0  ;;  %v563_v42 = vsel %vm469_vm3, %v234_v41, 0  ;;  %v235_v43 = vld [vmem:[%s210_s24 + $0xc] sm:$0xf] }
  0x15   : > { %v609_v44 = vsel %vm469_vm3, %v235_v43, 0 }
  0x17   : > { %786 = vmatmul.mubr.msk.bf16.vlgmr.msra.gmra.mxu0 %vm236_vm1, %v224_v9  ;;  %792 = vmatmul.mubr.msk.bf16.vlgmr.msra.gmra.mxu1 %vm236_vm1, %v225_v10 }
  0x18   : > { %796 = vmatpush3.bf16.xpose.msra.mxu0 %v333_v11  ;;  %802 = vmatpush3.bf16.xpose.msra.mxu1 %v379_v12 }
  0x19   : > { %797 = vmatprep.mubr.msk.bf16.mxu0 %vm866_vm0, %v865_v0  ;;  %803 = vmatprep.mubr.msk.bf16.mxu1 %vm866_vm0, %v865_v0 }
  0x1a   : > { %807 = vmatprep.subr.bf16.mxu0 %v865_v0  ;;  %813 = vmatprep.subr.bf16.mxu1 %v865_v0 }
  0x1f   : > { %798 = vmatmul.mubr.msk.bf16.vlgmr.msra.gmra.mxu0 %vm236_vm1, %v226_v15  ;;  %804 = vmatmul.mubr.msk.bf16.vlgmr.msra.gmra.mxu1 %vm236_vm1, %v227_v16 }
  0x20   : > { %809 = vmatprep.mubr.msk.bf16.mxu0 %vm866_vm0, %v865_v0  ;;  %815 = vmatprep.mubr.msk.bf16.mxu1 %vm866_vm0, %v865_v0 }
  0x21   : > { %808 = vmatpush3.bf16.msra.mxu0 %v471_v38  ;;  %814 = vmatpush3.bf16.msra.mxu1 %v517_v40 }
  0x22   : > { %819 = vmatprep.subr.bf16.mxu0 %v865_v0  ;;  %825 = vmatprep.subr.bf16.mxu1 %v865_v0 }
  0xd7   : > { %v277_v17 = vpop.f32.mrf.mxu0  ;;  %v323_v18 = vpop.f32.mrf.mxu1 }
  0xd8   : > { %v422_v19 = vsel %vm421_vm2, %v277_v17, -inf  ;;  %v425_v22 = vsel %vm421_vm2, %v323_v18, -inf }
  0xd9   : > { %v793_v20 = vpop.f32.mrf.mxu1  ;;  %423 = vmax.xlane.f32.xlu0 %v422_v19  ;;  %v787_v21 = vpop.f32.mrf.mxu0 }
  0xdb   : > { %v280_v23 = vpop.f32.mrf.mxu0  ;;  %v326_v24 = vpop.f32.mrf.mxu1 }
  0xdd   : > { %v794_v25 = vpop.f32.mrf.mxu1  ;;  %426 = vmax.xlane.f32.xlu0 %v425_v22  ;;  %v788_v26 = vpop.f32.mrf.mxu0 }
  0xdf   : > { %v369_v27 = vpop.f32.mrf.mxu0  ;;  %v415_v28 = vpop.f32.mrf.mxu1 }
  0xe0   : > { %v428_v29 = vsel %vm421_vm2, %v369_v27, -inf  ;;  %v431_v32 = vsel %vm421_vm2, %v415_v28, -inf }
  0xe1   : > { %v805_v30 = vpop.f32.mrf.mxu1  ;;  %429 = vmax.xlane.f32.xlu1 %v428_v29  ;;  %v799_v31 = vpop.f32.mrf.mxu0 }
  0xe3   : > { %v372_v33 = vpop.f32.mrf.mxu0  ;;  %v418_v34 = vpop.f32.mrf.mxu1 }
  0xe5   : > { %v806_v35 = vpop.f32.mrf.mxu1  ;;  %432 = vmax.xlane.f32.xlu1 %v431_v32  ;;  %v800_v36 = vpop.f32.mrf.mxu0 }
 0x162   : > { %v424_v45 = vpop.xlane.xlu0 %423 }
 0x163   : > { %v434_v46 = vsub.f32 %v277_v17, %v424_v45 }
 0x165   : > { %v438_v47 = vmul.f32 1.442695, %v434_v46 }
 0x166   : > { %v427_v48 = vpop.xlane.xlu0 %426 }
 0x167   : > { %841 = vpow2.f32 %v438_v47  ;;  %v435_v49 = vsub.f32 %v323_v18, %v427_v48 }
 0x169   : > { %v440_v50 = vmul.f32 1.442695, %v435_v49 }
 0x16a   : > { %v430_v51 = vpop.xlane.xlu1 %429 }
 0x16b   : > { %843 = vpow2.f32 %v440_v50  ;;  %v436_v52 = vsub.f32 %v369_v27, %v430_v51 }
 0x16d   : > { %v442_v53 = vmul.f32 1.442695, %v436_v52 }
 0x16e   : > { %v433_v54 = vpop.xlane.xlu1 %432 }
 0x16f   : > { %845 = vpow2.f32 %v442_v53  ;;  %v437_v55 = vsub.f32 %v415_v28, %v433_v54 }
 0x171   : > { %v444_v56 = vmul.f32 1.442695, %v437_v55 }
 0x173   : > { %847 = vpow2.f32 %v444_v56 }
 0x174   : > { %v842_v57 = vpop.eup %841 }
 0x175   : > { %v446_v58 = vsel %vm421_vm2, %v842_v57, 0.0  ;;  %v462_v59 = vpack.c.bf16 %v842_v57, %v842_v57 }
 0x176   : > { %447 = vadd.xlane.f32.xlu0 %v446_v58 }
 0x177   : > { %810 = vmatmul.mubr.msk.bf16.vlgmr.msra.gmra.mxu0 %vm421_vm2, %v462_v59 }
 0x178   : > { %v844_v60 = vpop.eup %843  ;;  %820 = vmatpush3.bf16.msra.mxu0 %v563_v42  ;;  %821 = vmatprep.mubr.msk.bf16.mxu0 %vm866_vm0, %v865_v0 }
 0x179   : > { %v449_v61 = vsel %vm421_vm2, %v844_v60, 0.0  ;;  %v463_v62 = vpack.c.bf16 %v844_v60, %v844_v60 }
 0x17a   : > { %450 = vadd.xlane.f32.xlu1 %v449_v61 }
 0x17b   : > { %816 = vmatmul.mubr.msk.bf16.vlgmr.msra.gmra.mxu1 %vm421_vm2, %v463_v62 }
 0x17c   : > { %v846_v63 = vpop.eup %845  ;;  %826 = vmatpush3.bf16.msra.mxu1 %v609_v44  ;;  %827 = vmatprep.mubr.msk.bf16.mxu1 %vm866_vm0, %v865_v0 }
 0x17d   : > { %v452_v1 = vsel %vm421_vm2, %v846_v63, 0.0  ;;  %v464_v2 = vpack.c.bf16 %v846_v63, %v846_v63 }
 0x17e   : > { %453 = vadd.xlane.f32.xlu0 %v452_v1 }
 0x17f   : > { %822 = vmatmul.mubr.msk.bf16.vlgmr.msra.gmra.mxu0 %vm421_vm2, %v464_v2 }
 0x180   : > { %v848_v3 = vpop.eup %847 }
 0x181   : > { %v455_v4 = vsel %vm421_vm2, %v848_v3, 0.0  ;;  %v465_v5 = vpack.c.bf16 %v848_v3, %v848_v3 }
 0x182   : > { %456 = vadd.xlane.f32.xlu1 %v455_v4 }
 0x183   : > { %828 = vmatmul.mubr.msk.bf16.vlgmr.msra.gmra.mxu1 %vm421_vm2, %v465_v5 }
 0x1ff   : > { %v448_v6 = vpop.xlane.xlu0 %447 }
 0x200   : > { %849 = vrcp.f32 %v448_v6 }
 0x203   : > { %v451_v7 = vpop.xlane.xlu1 %450 }
 0x204   : > { %851 = vrcp.f32 %v451_v7 }
 0x207   : > { %v454_v8 = vpop.xlane.xlu0 %453 }
 0x208   : > { %853 = vrcp.f32 %v454_v8 }
 0x20b   : > { %v457_v0 = vpop.xlane.xlu1 %456 }
 0x20c   : > { %855 = vrcp.f32 %v457_v0 }
 0x20d   : > { %v850_v9 = vpop.eup %849 }
 0x211   : > { %v852_v14 = vpop.eup %851 }
 0x215   : > { %v854_v21 = vpop.eup %853 }
 0x219   : > { %v856_v28 = vpop.eup %855 }
 0x237   : > { %v507_v10 = vpop.f32.mrf.mxu0 }
 0x238   : > { %v651_v11 = vmul.f32 %v850_v9, %v507_v10 }
 0x239   : > { %v811_v12 = vpop.f32.mrf.mxu0 }
 0x23a   : > { %v655_v13 = vpack.c.bf16 %v651_v11, %v651_v11 }
 0x23b   : > { %v510_v15 = vpop.f32.mrf.mxu0  ;;  %v553_v16 = vpop.f32.mrf.mxu1 }
 0x23c   : > { %660 = vst.msk [vmem:[%s216_s27] sm:$0xf] %vm659_vm4, %v655_v13  ;;  %v652_v17 = vmul.f32 %v852_v14, %v553_v16 }
 0x23d   : > { %v812_v18 = vpop.f32.mrf.mxu0  ;;  %v817_v19 = vpop.f32.mrf.mxu1 }
 0x23e   : > { %v656_v20 = vpack.c.bf16 %v652_v17, %v652_v17 }
 0x23f   : > { %v556_v22 = vpop.f32.mrf.mxu1  ;;  %v599_v23 = vpop.f32.mrf.mxu0 }
 0x240   : > { %661 = vst.msk [vmem:[%s216_s27 + $0x4] sm:$0xf] %vm659_vm4, %v656_v20  ;;  %v653_v24 = vmul.f32 %v854_v21, %v599_v23 }
 0x241   : > { %v818_v25 = vpop.f32.mrf.mxu1  ;;  %v823_v26 = vpop.f32.mrf.mxu0 }
 0x242   : > { %v657_v27 = vpack.c.bf16 %v653_v24, %v653_v24 }
 0x243   : > { %v602_v29 = vpop.f32.mrf.mxu0  ;;  %v645_v30 = vpop.f32.mrf.mxu1 }
 0x244   : > { %662 = vst.msk [vmem:[%s216_s27 + $0x8] sm:$0xf] %vm659_vm4, %v657_v27  ;;  %v654_v31 = vmul.f32 %v856_v28, %v645_v30 }
 0x245   : > { %v824_v32 = vpop.f32.mrf.mxu0  ;;  %v829_v33 = vpop.f32.mrf.mxu1 }
 0x246   : > { %v658_v34 = vpack.c.bf16 %v654_v31, %v654_v31 }
 0x247   : > { %v648_v35 = vpop.f32.mrf.mxu1 }
 0x248   : > { %663 = vst.msk [vmem:[%s216_s27 + $0xc] sm:$0xf] %vm659_vm4, %v658_v34 }
 0x249   : > { %v830_v36 = vpop.f32.mrf.mxu1 }
 0x24a PF: > { %s13_s12 = sadd.s32 1, %s863_s12  }
 0x24b   : > { %p10_p4 = scmp.ge.s32.totalorder %s13_s12, 4  }
 0x24d   :  { %12 = sbr.rel (!%p10_p4) target bundleno = 1 (0x1), region = 68 }

// kernel: multi_head_attention_forward.5
= control target key start
LH: loop header
LB: loop body
LE: loop exit
PB: predicated region body
PF: predicated region fallthrough
CT: control target
= control target key end

     0   :  { %v289_v1 = vmov 0.0   ;;  %vm290_vm0 = vmmov 0   ;;  %s374_s0 = inlined_call_operand.vmem [shape: bf16[16,128], index: 0, kind: input, shape index: {}]   ;;  %s375_s1 = inlined_call_operand.vmem [shape: bf16[128,128], index: 1, kind: input, shape index: {}]   ;;  %s376_s2 = inlined_call_operand.vmem [shape: f32[1,128], index: 2, kind: input, shape index: {}]   ;;  %s377_s3 = inlined_call_operand.vmem [shape: f32[16,128], index: 3, kind: input, shape index: {}]   ;;  %s378_s4 = inlined_call_operand.vmem [shape: f32[1,128], index: 4, kind: input, shape index: {}]   ;;  %s379_s5 = inlined_call_operand.vmem [shape: f32[1,128], index: 5, kind: input, shape index: {}]   ;;  %s380_s6 = inlined_call_operand.hbm [shape: f32[16,128], index: 6, kind: output, shape index: {}]  }
   0x1   :  { %v254_v0 = vld [vmem:[%s375_s1 + $0x38] sm:$0xff]   ;;  %229 = vmatprep.subr.bf16.mxu0 %v289_v1  ;;  %v255_v2 = vld [vmem:[%s375_s1 + $0x30] sm:$0xff]   ;;  %245 = vmatprep.mubr.msk.bf16.mxu0 %vm290_vm0, %v289_v1  ;;  %v256_v3 = vld [vmem:[%s375_s1 + $0x28] sm:$0xff]  }
   0x2   :  { %230 = vmatpush3.bf16.msra.mxu0 %v254_v0 }
   0x3   :  { %231 = vmatprep.subr.bf16.mxu0 %v289_v1 }
   0x6   :  { %232 = vmatpush3.bf16.msra.mxu0 %v255_v2 }
   0x7   :  { %233 = vmatprep.subr.bf16.mxu0 %v289_v1 }
   0x8   :  { %11 = vsyncpa [#allocation3], 0  ;;  %v257_v4 = vld [vmem:[%s375_s1 + $0x20] sm:$0xff]   ;;  %v258_v5 = vld [vmem:[%s375_s1 + $0x18] sm:$0xff]   ;;  %s291_s21 = smov [#allocation2]  }
   0x9   :  { %v259_v6 = vld [vmem:[%s375_s1 + $0x10] sm:$0xff]   ;;  %v260_v7 = vld [vmem:[%s375_s1 + $0x8] sm:$0xff]   ;;  %v261_v8 = vld [vmem:[%s375_s1] sm:$0xff]   ;;  %s197_s22 = sshll.u32 %s291_s21, 4  ;;  %s198_s22 = int_to_ptr.vmem [resolvable:$true] %s197_s22 }
   0xa   :  { %234 = vmatpush3.bf16.msra.mxu0 %v256_v3  ;;  %v262_v9 = vld [vmem:[%s374_s0] sm:$0xff]   ;;  %v146_v17 = vld [vmem:[%s377_s3 + $0x8] sm:$0xff]  ;;  %s267_s23 = scalar_lea.vmem %s198_s22, 256  ;;  %p272_p1 = scmp.lt.s32.totalorder %s198_s22, %s198_s22 }
   0xb   :  { %235 = vmatprep.subr.bf16.mxu0 %v289_v1  ;;  %v208_v10 = vld [vmem:[%s376_s2] ss:$0 sm:$0xff]  ;;  %p268_p0 = scmp.ne.s32.totalorder %s198_s22, %s267_s23  ;;  %p273_p2 = scmp.lt.s32.totalorder %s267_s23, %s267_s23 }
   0xc   :  { %v145_v12 = vld [vmem:[%s377_s3] sm:$0xff] }
   0xd   :  { %v218_v36 = vld [vmem:[%s378_s4] ss:$0 sm:$0xff]  ;;  %p274_p3 = por %p273_p2, %p272_p1 }
   0xe   :  { %236 = vmatpush3.bf16.msra.mxu0 %v257_v4  ;;  %v219_v38 = vld [vmem:[%s379_s5] ss:$0 sm:$0xff] }
   0xf   :  { %237 = vmatprep.subr.bf16.mxu0 %v289_v1  ;;  %p275_p4 = pnand %p274_p3, %p268_p0 }
  0x12   :  { %238 = vmatpush3.bf16.msra.mxu0 %v258_v5 }
  0x13   :  { %239 = vmatprep.subr.bf16.mxu0 %v289_v1 }
  0x16   :  { %240 = vmatpush3.bf16.msra.mxu0 %v259_v6 }
  0x17   :  { %241 = vmatprep.subr.bf16.mxu0 %v289_v1 }
  0x1a   :  { %242 = vmatpush3.bf16.msra.mxu0 %v260_v7 }
  0x1b   :  { %243 = vmatprep.subr.bf16.mxu0 %v289_v1 }
  0x1e   :  { %244 = vmatpush3.bf16.msra.mxu0 %v261_v8 }
  0x21   :  { %246 = vmatmul.mubr.bf16.vlgmr.msra.gmra.mxu0 %v262_v9 }
  0xe1   :  { %v138_v11 = vpop.f32.mrf.mxu0 }
  0xe2   :  { %v139_v13 = vadd.f32 %v208_v10, %v138_v11 }
  0xe3   :  { %v247_v14 = vpop.f32.mrf.mxu0 }
  0xe4   :  { %v147_v15 = vadd.f32 %v145_v12, %v139_v13 }
  0xe5   :  { %v141_v16 = vpop.f32.mrf.mxu0 }
  0xe6   :  { %v142_v18 = vadd.f32 %v208_v10, %v141_v16  ;;  %149 = vadd.xlane.f32.xlu0 %v147_v15 }
  0xe7   :  { %v248_v19 = vpop.f32.mrf.mxu0 }
  0xe8   :  { %v148_v20 = vadd.f32 %v146_v17, %v142_v18 }
  0xea   :  { %151 = vadd.xlane.f32.xlu0 %v148_v20 }
 0x16f   :  { %v150_v21 = vpop.xlane.xlu0 %149 }
 0x170   :  { %v154_v22 = vmul.f32 0.0078125, %v150_v21 }
 0x172   :  { %v156_v23 = vsub.f32 %v147_v15, %v154_v22 }
 0x173   :  { %v152_v24 = vpop.xlane.xlu0 %151 }
 0x174   :  { %v155_v25 = vmul.f32 0.0078125, %v152_v24  ;;  %v158_v26 = vmul.f32 %v156_v23, %v156_v23 }
 0x176   :  { %v157_v27 = vsub.f32 %v148_v20, %v155_v25  ;;  %160 = vadd.xlane.f32.xlu1 %v158_v26 }
 0x178   :  { %v159_v28 = vmul.f32 %v157_v27, %v157_v27 }
 0x17a   :  { %162 = vadd.xlane.f32.xlu1 %v159_v28 }
 0x1ff   :  { %v161_v29 = vpop.xlane.xlu1 %160 }
 0x200   :  { %v164_v30 = vmul.f32 0.0078125, %v161_v29 }
 0x202   :  { %v166_v31 = vadd.f32 1e-05, %v164_v30 }
 0x203   :  { %v163_v32 = vpop.xlane.xlu1 %162 }
 0x204   :  { %263 = vrsqrt.f32 %v166_v31  ;;  %v165_v33 = vmul.f32 0.0078125, %v163_v32 }
 0x206   :  { %v167_v34 = vadd.f32 1e-05, %v165_v33 }
 0x208   :  { %265 = vrsqrt.f32 %v167_v34 }
 0x211   :  { %v264_v35 = vpop.eup %263 }
 0x212   :  { %v170_v37 = vmul.f32 %v264_v35, %v156_v23 }
 0x214   :  { %v179_v39 = vmul.f32 %v218_v36, %v170_v37 }
 0x215   :  { %v266_v40 = vpop.eup %265 }
 0x216   :  { %v171_v41 = vmul.f32 %v266_v40, %v157_v27  ;;  %v188_v42 = vadd.f32 %v219_v38, %v179_v39 }
 0x218   :  { %v180_v43 = vmul.f32 %v218_v36, %v171_v41  ;;  %190 = vst [vmem:[#allocation2] sm:$0xff] %v188_v42 }
 0x21a   :  { %v189_v44 = vadd.f32 %v219_v38, %v180_v43 }
 0x21c   :  { %191 = vst [vmem:[#allocation2 + $0x8] sm:$0xff] %v189_v44 }
 0x21d   :  { %278 = shalt.err (!%p275_p4)
}
 0x21e   :  { %s292_s4 = smov 128   ;;  %s293_s5 = smov 8  }
 0x21f   :  { %203 = dma.vmem_to_hbm [thread:$0]  %s198_s22, 256, %s380_s6, [#allocation3], %s292_s4, %s292_s4, %s293_s5  }
 0x220   :  { %287 = dma.done.wait [#allocation3], 256  }
 0x221   :  { %288 = vsyncadd [#allocation3], 4294967040 }
 0x222   :  { %207 = vsyncpa [#allocation3], 1 }

</bundles_post_ra>
